<compile_context>
chip_gen: v7x
topology: tpu7x:2x2x1
jax: 0.10.0
libtpu: 0.0.40
codegen_flags: <defaults>
</compile_context>

<pallas_src>
import functools

import numpy as np
import jax
import jax.numpy as jnp
from jax import lax
from jax.experimental import pallas as pl
from jax.experimental.pallas import tpu as pltpu


# ---------------------------------------------------------------------------
# Pallas kernel: one (batch element, TH output rows) tile of the residual block.
# All activations are lane-dense: (rows, W*C).
# ---------------------------------------------------------------------------
def _block_kernel(x_ref, halo_ref, w1_ref, w2_ref, b1_ref, bo_ref, o_ref, *,
                  H, W, TH, Cmid, Cout, compute_dtype):
    i = pl.program_id(1)
    r0 = i * TH                                    # first output row of this tile

    # Input slab covering image rows [r0-2, r0+TH+2); halo rows were pre-gathered
    # host-side (zeros outside the image) and arrive via their own auto-pipelined
    # BlockSpec, so there is no exposed DMA here.
    xt = x_ref[...].reshape(TH, -1)                # (TH, W*Cin)
    hl = halo_ref[...].reshape(4, -1)              # (4,  W*Cin)
    xs = jnp.concatenate([hl[0:2], xt, hl[2:4]], axis=0)          # (TH+4, W*Cin)

    # conv1 (3x3) + fused 1x1 identity projection: ONE matmul.  The three kernel
    # rows (dy) are concatenated along K; the three column taps (dx) and the
    # column zero-padding live inside the banded weight matrix, so no per-step
    # rolls / zero-concat pads / im2col relayouts are needed.  Output rows span
    # r0-1 .. r0+TH (TH+2 rows = conv2's row halo).
    lhs1 = jnp.concatenate([xs[0:TH + 2], xs[1:TH + 3], xs[2:TH + 4]], axis=-1)
    z = jnp.dot(lhs1, w1_ref[...],
                preferred_element_type=jnp.float32)               # (TH+2, W*(Cmid+Cout))

    y1 = jnp.maximum(z[:, :W * Cmid] + b1_ref[...], 0.0)          # bias + ReLU, f32
    # conv2 zero-pads its input: y1 rows outside the image must be exactly zero.
    # (A (TH+2,1) mask on a lane-dense slab — negligible; interior tiles could
    # skip it, not worth a pl.when.)
    row = r0 - 1 + lax.broadcasted_iota(jnp.int32, (TH + 2, 1), 0)
    y1 = jnp.where((row >= 0) & (row < H), y1, 0.0).astype(compute_dtype)

    # identity-projection values for the TH real output rows (extra matmul cols).
    ident = z[1:TH + 1, W * Cmid:]                                # (TH, W*Cout), f32

    # conv2 (3x3): ONE matmul in the same layout.
    lhs2 = jnp.concatenate([y1[0:TH], y1[1:TH + 1], y1[2:TH + 2]], axis=-1)
    acc2 = jnp.dot(lhs2, w2_ref[...],
                   preferred_element_type=jnp.float32)            # (TH, W*Cout)

    # Epilogue directly in the lane-dense (TH, W*Cout) output layout.
    out = jnp.maximum(acc2 + ident + bo_ref[...], 0.0)
    o_ref[...] = out.reshape(1, TH, W * Cout).astype(o_ref.dtype)


# ---------------------------------------------------------------------------
# Host-side helpers.
# ---------------------------------------------------------------------------
def _fold_bn(gamma, beta, mean, var, conv_bias, eps=1e-5):
    """Return (scale, bias) so that BN(conv(x)+b) == conv_{w*scale}(x) + bias."""
    scale = gamma / jnp.sqrt(var + eps)
    bias = beta + (conv_bias - mean) * scale
    return scale, bias


def _band_weight(w_hwio, W):
    """(3,3,Ci,Co) HWIO conv weight -> (3*W*Ci, W*Co) column-banded matmul RHS.

    RHS[dy*W*Ci + w_in*Ci + c, w_out*Co + o] = w[dy, w_in - w_out + 1, c, o] when
    |w_in - w_out| <= 1, else 0 — i.e. the dx taps and the column zero-padding of
    the conv are folded into the weight matrix (built once on the host).
    """
    Ci, Co = w_hwio.shape[2], w_hwio.shape[3]
    win = np.arange(W)[:, None]
    wout = np.arange(W)[None, :]
    dx = np.clip(win - wout + 1, 0, 2)                     # (W_in, W_out) static
    band = (np.abs(win - wout) <= 1).astype(np.float32)    # (W_in, W_out) static
    wb = w_hwio[:, dx] * band[None, :, :, None, None]      # (3, W_in, W_out, Ci, Co)
    wb = jnp.transpose(wb, (0, 1, 3, 2, 4))                # (3, W_in, Ci, W_out, Co)
    return wb.reshape(3 * W * Ci, W * Co)


def _proj_weight(wp, W):
    """(Ci,Co) 1x1 projection -> (3*W*Ci, W*Co) columns tied to the centre row."""
    Ci, Co = wp.shape
    eye = np.eye(W, dtype=np.float32)
    center = eye[:, None, :, None] * wp[None, :, None, :]  # (W, Ci, W, Co)
    full = jnp.zeros((3, W, Ci, W, Co), wp.dtype).at[1].set(center)
    return full.reshape(3 * W * Ci, W * Co)


def _vmem_budget_bytes():
    """Per-generation VMEM budget (v5e/v6e: 128 MiB, v7x: 64 MiB per core)."""
    try:
        cap = int(pltpu.get_tpu_info().vmem_capacity_bytes)
    except Exception:
        cap = 64 * 1024 * 1024
    return min(cap // 2, 48 * 1024 * 1024)


def _vmem_estimate_bytes(TH, W, Cin, Cmid, Cout, wbytes):
    """Rough per-step footprint (BlockSpec double-buffers every operand)."""
    k1, n1 = 3 * W * Cin, W * (Cmid + Cout)
    k2, n2 = 3 * W * Cmid, W * Cout
    weights = (k1 * n1 + k2 * n2) * wbytes * 2
    biases = (n1 + n2) * 4 * 2
    x_blk = (TH + 4) * W * Cin * wbytes * 2
    o_blk = TH * W * Cout * 4 * 2
    interm = ((TH + 4) * W * Cin * wbytes + (TH + 2) * (k1 + n1) * 4
              + (TH + 2) * W * Cmid * (4 + wbytes) + TH * (k2 * wbytes + n2 * 12))
    return weights + biases + x_blk + o_blk + int(1.5 * interm)


def _pick_row_tile(H, W, Cin, Cmid, Cout, wbytes, budget):
    """Largest row tile (divisor of H, 8-aligned or == H) that fits the budget."""
    cands = [d for d in range(H, 0, -1)
             if H % d == 0 and (d == H or d % 8 == 0)]
    for th in cands:                                      # biggest first
        if _vmem_estimate_bytes(th, W, Cin, Cmid, Cout, wbytes) <= budget:
            return th
    return cands[-1]


def resnet_decoder_basic_block_nhwc(x, params, *, use_bf16=True, row_tile=None,
                                    out_dtype=jnp.float32):
    """x: (N, H, W, Cin) float32 NHWC. Returns (N, H, W, Cout) in out_dtype."""
    N, H, W, Cin = x.shape
    Cmid = params["w1"].shape[3]
    Cout = params["w2"].shape[3]
    cdt = jnp.bfloat16 if use_bf16 else jnp.float32
    wbytes = jnp.dtype(cdt).itemsize

    budget = _vmem_budget_bytes()
    TH = row_tile if row_tile is not None else _pick_row_tile(
        H, W, Cin, Cmid, Cout, wbytes, budget)
    assert H % TH == 0 and (TH == H or TH % 8 == 0), (H, TH)
    NT = H // TH

    # ---- parameter-only prep: fold BN into weights/biases, band over W ----
    s1, b1 = _fold_bn(params["g1"], params["b1"], params["m1"], params["v1"], params["cb1"])
    s2, b2 = _fold_bn(params["g2"], params["b2"], params["m2"], params["v2"], params["cb2"])
    sp, bp = _fold_bn(params["gp"], params["bp"], params["mp"], params["vp"], params["cbp"])
    w1 = (params["w1"] * s1).astype(jnp.float32)           # (3,3,Cin,Cmid) HWIO
    w2 = (params["w2"] * s2).astype(jnp.float32)           # (3,3,Cmid,Cout)
    wp = (params["wp"] * sp).astype(jnp.float32)           # (Cin,Cout)

    # conv1 RHS: banded conv columns | projection columns (centre dy row block).
    rhs1 = jnp.concatenate([_band_weight(w1, W), _proj_weight(wp, W)],
                           axis=1).astype(cdt)             # (3*W*Cin, W*(Cmid+Cout))
    rhs2 = _band_weight(w2, W).astype(cdt)                 # (3*W*Cmid, W*Cout)
    b1r = jnp.tile(b1, W).reshape(1, W * Cmid).astype(jnp.float32)
    bor = jnp.tile(b2 + bp, W).reshape(1, W * Cout).astype(jnp.float32)

    # ---- lane-dense input view + per-tile halo rows (zeros outside the image) ----
    xf = x.astype(cdt).reshape(N, H, W * Cin)
    xp = jnp.pad(xf, ((0, 0), (2, 2), (0, 0)))
    hidx = np.stack([np.arange(NT) * TH + o for o in (0, 1, TH + 2, TH + 3)], axis=1)
    halo = xp[:, hidx, :]                                  # (N, NT, 4, W*Cin)

    kern = functools.partial(_block_kernel, H=H, W=W, TH=TH, Cmid=Cmid, Cout=Cout,
                             compute_dtype=cdt)
    out_flat = pl.pallas_call(
        kern,
        out_shape=jax.ShapeDtypeStruct((N, H, W * Cout), out_dtype),
        grid=(N, NT),
        in_specs=[
            pl.BlockSpec((1, TH, W * Cin), lambda n, i: (n, i, 0)),
            pl.BlockSpec((1, 1, 4, W * Cin), lambda n, i: (n, i, 0, 0)),
            # TODO(synk): weights never change across the grid; pl.Buffered(1)
            # on these specs would halve their VMEM residency.
            pl.BlockSpec((3 * W * Cin, W * (Cmid + Cout)), lambda n, i: (0, 0)),
            pl.BlockSpec((3 * W * Cmid, W * Cout), lambda n, i: (0, 0)),
            pl.BlockSpec((1, W * Cmid), lambda n, i: (0, 0)),
            pl.BlockSpec((1, W * Cout), lambda n, i: (0, 0)),
        ],
        out_specs=pl.BlockSpec((1, TH, W * Cout), lambda n, i: (n, i, 0)),
        compiler_params=pltpu.CompilerParams(
            dimension_semantics=("parallel", "parallel"),
            vmem_limit_bytes=int(budget)),
    )(xf, halo, rhs1, rhs2, b1r, bor)

    return out_flat.reshape(N, H, W, Cout)


def resnet_decoder_basic_block(x_nchw, params, *, use_bf16=True, row_tile=None):
    """PyTorch-layout convenience wrapper: (N, Cin, H, W) -> (N, Cout, H, W)."""
    # TODO(synk): the two transposes are interface glue for the NCHW harness; in
    # an NHWC pipeline call resnet_decoder_basic_block_nhwc directly.
    x = jnp.transpose(x_nchw, (0, 2, 3, 1))
    out = resnet_decoder_basic_block_nhwc(x, params, use_bf16=use_bf16,
                                          row_tile=row_tile)
    return jnp.transpose(out, (0, 3, 1, 2))


# ---------------------------------------------------------------------------
# Pure-JAX reference (NHWC) for correctness checking.
# ---------------------------------------------------------------------------
def _ref_forward(x_nchw, params, eps=1e-5):
    x = jnp.transpose(x_nchw, (0, 2, 3, 1)).astype(jnp.float32)

    def conv(x, w, pad):
        return lax.conv_general_dilated(
            x, w, window_strides=(1, 1), padding=pad,
            dimension_numbers=("NHWC", "HWIO", "NHWC"),
            precision=lax.Precision.HIGHEST)

    def bn(x, g, b, m, v):
        return (x - m) / jnp.sqrt(v + eps) * g + b

    ident = conv(x, params["wp"][None, None], "VALID") + params["cbp"]
    ident = bn(ident, params["gp"], params["bp"], params["mp"], params["vp"])

    out = conv(x, params["w1"], ((1, 1), (1, 1))) + params["cb1"]
    out = jnp.maximum(bn(out, params["g1"], params["b1"], params["m1"], params["v1"]), 0.0)
    out = conv(out, params["w2"], ((1, 1), (1, 1))) + params["cb2"]
    out = bn(out, params["g2"], params["b2"], params["m2"], params["v2"])
    out = jnp.maximum(out + ident, 0.0)
    return jnp.transpose(out, (0, 3, 1, 2))


# ---------------------------------------------------------------------------
# Deterministic parameter init (shapes from the module __init__).
# ---------------------------------------------------------------------------
def make_params(key, inplanes, planes):
    ks = jax.random.split(key, 16)
    u = functools.partial(jax.random.uniform, minval=0.5, maxval=1.5)
    n = jax.random.normal
    p = {
        # conv1: 3x3 inplanes->planes (HWIO), conv2: 3x3 planes->planes
        "w1": 0.2 * n(ks[0], (3, 3, inplanes, planes), jnp.float32),
        "cb1": 0.1 * n(ks[1], (planes,), jnp.float32),
        "w2": 0.2 * n(ks[2], (3, 3, planes, planes), jnp.float32),
        "cb2": 0.1 * n(ks[3], (planes,), jnp.float32),
        # identity_proj: 1x1 inplanes->planes
        "wp": 0.2 * n(ks[4], (inplanes, planes), jnp.float32),
        "cbp": 0.1 * n(ks[5], (planes,), jnp.float32),
        # bn1 / bn2 / bn_proj : gamma, beta, running_mean, running_var
        "g1": u(ks[6], (planes,), jnp.float32), "b1": 0.1 * n(ks[7], (planes,), jnp.float32),
        "m1": 0.1 * n(ks[8], (planes,), jnp.float32), "v1": u(ks[9], (planes,), jnp.float32),
        "g2": u(ks[10], (planes,), jnp.float32), "b2": 0.1 * n(ks[11], (planes,), jnp.float32),
        "m2": 0.1 * n(ks[12], (planes,), jnp.float32), "v2": u(ks[13], (planes,), jnp.float32),
        "gp": u(ks[14], (planes,), jnp.float32), "bp": 0.1 * n(ks[15], (planes,), jnp.float32),
        "mp": jnp.zeros((planes,), jnp.float32), "vp": jnp.ones((planes,), jnp.float32),
    }
    return p


if __name__ == "__main__":
    key = jax.random.PRNGKey(0)
    kx, kp = jax.random.split(key)

    N, inplanes, planes, H, W = 2, 4, 8, 16, 16
    x = jax.random.normal(kx, (N, inplanes, H, W), jnp.float32)   # NCHW, like PyTorch
    params = make_params(kp, inplanes, planes)

    ref = jax.block_until_ready(_ref_forward(x, params))

    # f32 MXU operands: parity with the f32 PyTorch module.
    out_f32 = jax.block_until_ready(
        resnet_decoder_basic_block(x, params, use_bf16=False))
    assert out_f32.shape == (N, planes, H, W), out_f32.shape
    err = float(jnp.max(jnp.abs(out_f32 - ref)))
    assert jnp.allclose(out_f32, ref, rtol=1e-3, atol=1e-3), err

    # Default path: bf16 MXU operands (f32 accumulation + f32 epilogue).
    out_bf16 = jax.block_until_ready(resnet_decoder_basic_block(x, params))
    err_bf16 = float(jnp.max(jnp.abs(out_bf16 - ref)))
    assert jnp.allclose(out_bf16, ref, rtol=5e-2, atol=1.5e-1), err_bf16

    print("KERNEL_OK")
</pallas_src>

<mosaic_0001>
module attributes {stable_mosaic.version = 11 : i64} {
  func.func @_block_kernel(%arg0: i32, %arg1: i32, %arg2: memref<1x16x64xf32, #tpu.memory_space<vmem>>, %arg3: memref<1x1x4x64xf32, #tpu.memory_space<vmem>>, %arg4: memref<192x256xf32, #tpu.memory_space<vmem>>, %arg5: memref<384x128xf32, #tpu.memory_space<vmem>>, %arg6: memref<1x128xf32, #tpu.memory_space<vmem>>, %arg7: memref<1x128xf32, #tpu.memory_space<vmem>>, %arg8: memref<1x16x128xf32, #tpu.memory_space<vmem>>) attributes {dimension_semantics = [#tpu.dimension_semantics<parallel>, #tpu.dimension_semantics<parallel>], iteration_bounds = array<i64: 2, 1>, scalar_prefetch = 0 : i64, scratch_operands = 0 : i64, tpu.core_type = #tpu.core_type<tc>, window_params = [{transform_indices = @transform_0, window_bounds = array<i64: 1, 16, 64>}, {transform_indices = @transform_1, window_bounds = array<i64: 1, 1, 4, 64>}, {pipeline_mode = #tpu.pipeline_mode<synchronous>, transform_indices = @transform_2, window_bounds = array<i64: 192, 256>}, {pipeline_mode = #tpu.pipeline_mode<synchronous>, transform_indices = @transform_3, window_bounds = array<i64: 384, 128>}, {pipeline_mode = #tpu.pipeline_mode<synchronous>, transform_indices = @transform_4, window_bounds = array<i64: 1, 128>}, {pipeline_mode = #tpu.pipeline_mode<synchronous>, transform_indices = @transform_5, window_bounds = array<i64: 1, 128>}, {transform_indices = @transform_6, window_bounds = array<i64: 1, 16, 128>}]} {
    %c16_i32 = arith.constant 16 : i32
    %0 = arith.muli %arg1, %c16_i32 : i32
    %c0 = arith.constant 0 : index
    %c0_0 = arith.constant 0 : index
    %c0_1 = arith.constant 0 : index
    %1 = vector.load %arg2[%c0, %c0_0, %c0_1] : memref<1x16x64xf32, #tpu.memory_space<vmem>>, vector<1x16x64xf32>
    %2 = vector.shape_cast %1 : vector<1x16x64xf32> to vector<16x64xf32>
    %c0_2 = arith.constant 0 : index
    %c0_3 = arith.constant 0 : index
    %c0_4 = arith.constant 0 : index
    %c0_5 = arith.constant 0 : index
    %3 = vector.load %arg3[%c0_2, %c0_3, %c0_4, %c0_5] : memref<1x1x4x64xf32, #tpu.memory_space<vmem>>, vector<1x1x4x64xf32>
    %4 = vector.shape_cast %3 : vector<1x1x4x64xf32> to vector<4x64xf32>
    %5 = vector.extract_strided_slice %4 {offsets = [0, 0], sizes = [2, 64], strides = [1, 1]} : vector<4x64xf32> to vector<2x64xf32>
    %6 = vector.extract_strided_slice %4 {offsets = [2, 0], sizes = [2, 64], strides = [1, 1]} : vector<4x64xf32> to vector<2x64xf32>
    %7 = tpu.concatenate %5, %2, %6 in 0 : vector<2x64xf32>, vector<16x64xf32>, vector<2x64xf32> -> vector<20x64xf32>
    %8 = vector.extract_strided_slice %7 {offsets = [0, 0], sizes = [18, 64], strides = [1, 1]} : vector<20x64xf32> to vector<18x64xf32>
    %9 = vector.extract_strided_slice %7 {offsets = [1, 0], sizes = [18, 64], strides = [1, 1]} : vector<20x64xf32> to vector<18x64xf32>
    %10 = vector.extract_strided_slice %7 {offsets = [2, 0], sizes = [18, 64], strides = [1, 1]} : vector<20x64xf32> to vector<18x64xf32>
    %11 = tpu.concatenate %8, %9, %10 in 1 : vector<18x64xf32>, vector<18x64xf32>, vector<18x64xf32> -> vector<18x192xf32>
    %c0_6 = arith.constant 0 : index
    %c0_7 = arith.constant 0 : index
    %12 = vector.load %arg4[%c0_6, %c0_7] : memref<192x256xf32, #tpu.memory_space<vmem>>, vector<192x256xf32>
    %cst = arith.constant dense<0.000000e+00> : vector<18x256xf32>
    %13 = tpu.matmul %11, %12, %cst {dimension_numbers = #tpu.dot_dimension_numbers<[1], [0], [0], [1], [0, 0, 1, 1], [], []>} : vector<18x192xf32>, vector<192x256xf32>, vector<18x256xf32> -> vector<18x256xf32>
    %14 = vector.extract_strided_slice %13 {offsets = [0, 0], sizes = [18, 128], strides = [1, 1]} : vector<18x256xf32> to vector<18x128xf32>
    %c0_8 = arith.constant 0 : index
    %c0_9 = arith.constant 0 : index
    %15 = vector.load %arg6[%c0_8, %c0_9] : memref<1x128xf32, #tpu.memory_space<vmem>>, vector<1x128xf32>
    %16 = vector.broadcast %15 : vector<1x128xf32> to vector<18x128xf32>
    %17 = arith.addf %14, %16 : vector<18x128xf32>
    %cst_10 = arith.constant 0.000000e+00 : f32
    %18 = vector.broadcast %cst_10 : f32 to vector<18x128xf32>
    %19 = arith.maximumf %17, %18 : vector<18x128xf32>
    %c1_i32 = arith.constant 1 : i32
    %20 = arith.subi %0, %c1_i32 : i32
    %21 = tpu.iota {dimensions = array<i32: 0>} : vector<18x1xi32>
    %22 = vector.broadcast %20 : i32 to vector<18x1xi32>
    %23 = arith.addi %22, %21 : vector<18x1xi32>
    %c0_i32 = arith.constant 0 : i32
    %24 = vector.broadcast %c0_i32 : i32 to vector<18x1xi32>
    %25 = arith.cmpi sge, %23, %24 : vector<18x1xi32>
    %c16_i32_11 = arith.constant 16 : i32
    %26 = vector.broadcast %c16_i32_11 : i32 to vector<18x1xi32>
    %27 = arith.cmpi slt, %23, %26 : vector<18x1xi32>
    %28 = arith.andi %25, %27 : vector<18x1xi1>
    %cst_12 = arith.constant 0.000000e+00 : f32
    %29 = vector.shape_cast %28 : vector<18x1xi1> to vector<18x1xi1>
    %30 = vector.broadcast %29 : vector<18x1xi1> to vector<18x128xi1>
    %31 = vector.broadcast %cst_12 : f32 to vector<18x128xf32>
    %32 = arith.select %30, %19, %31 : vector<18x128xi1>, vector<18x128xf32>
    %33 = vector.extract_strided_slice %13 {offsets = [1, 128], sizes = [16, 128], strides = [1, 1]} : vector<18x256xf32> to vector<16x128xf32>
    %34 = vector.extract_strided_slice %32 {offsets = [0, 0], sizes = [16, 128], strides = [1, 1]} : vector<18x128xf32> to vector<16x128xf32>
    %35 = vector.extract_strided_slice %32 {offsets = [1, 0], sizes = [16, 128], strides = [1, 1]} : vector<18x128xf32> to vector<16x128xf32>
    %36 = vector.extract_strided_slice %32 {offsets = [2, 0], sizes = [16, 128], strides = [1, 1]} : vector<18x128xf32> to vector<16x128xf32>
    %37 = tpu.concatenate %34, %35, %36 in 1 : vector<16x128xf32>, vector<16x128xf32>, vector<16x128xf32> -> vector<16x384xf32>
    %c0_13 = arith.constant 0 : index
    %c0_14 = arith.constant 0 : index
    %38 = vector.load %arg5[%c0_13, %c0_14] : memref<384x128xf32, #tpu.memory_space<vmem>>, vector<384x128xf32>
    %cst_15 = arith.constant dense<0.000000e+00> : vector<16x128xf32>
    %39 = tpu.matmul %37, %38, %cst_15 {dimension_numbers = #tpu.dot_dimension_numbers<[1], [0], [0], [1], [0, 0, 1, 1], [], []>} : vector<16x384xf32>, vector<384x128xf32>, vector<16x128xf32> -> vector<16x128xf32>
    %40 = arith.addf %39, %33 : vector<16x128xf32>
    %c0_16 = arith.constant 0 : index
    %c0_17 = arith.constant 0 : index
    %41 = vector.load %arg7[%c0_16, %c0_17] : memref<1x128xf32, #tpu.memory_space<vmem>>, vector<1x128xf32>
    %42 = vector.broadcast %41 : vector<1x128xf32> to vector<16x128xf32>
    %43 = arith.addf %40, %42 : vector<16x128xf32>
    %cst_18 = arith.constant 0.000000e+00 : f32
    %44 = vector.broadcast %cst_18 : f32 to vector<16x128xf32>
    %45 = arith.maximumf %43, %44 : vector<16x128xf32>
    %46 = vector.shape_cast %45 : vector<16x128xf32> to vector<1x16x128xf32>
    %c0_19 = arith.constant 0 : index
    %c0_20 = arith.constant 0 : index
    %c0_21 = arith.constant 0 : index
    %47 = vector.load %arg8[%c0_19, %c0_20, %c0_21] : memref<1x16x128xf32, #tpu.memory_space<vmem>>, vector<1x16x128xf32>
    tpu.vector_store %arg8[%c0_19, %c0_20, %c0_21], %46 {strides = array<i32>} : memref<1x16x128xf32, #tpu.memory_space<vmem>>, vector<1x16x128xf32>,
    return
  }
  func.func @transform_0(%arg0: i32, %arg1: i32) -> (i32, i32, i32) {
    %c0_i32 = arith.constant 0 : i32
    %c0_i32_0 = arith.constant 0 : i32
    return %arg0, %arg1, %c0_i32 : i32, i32, i32
  }
  func.func @transform_1(%arg0: i32, %arg1: i32) -> (i32, i32, i32, i32) {
    %c0_i32 = arith.constant 0 : i32
    %c0_i32_0 = arith.constant 0 : i32
    %c0_i32_1 = arith.constant 0 : i32
    return %arg0, %arg1, %c0_i32, %c0_i32_0 : i32, i32, i32, i32
  }
  func.func @transform_2(%arg0: i32, %arg1: i32) -> (i32, i32) {
    %c0_i32 = arith.constant 0 : i32
    %c0_i32_0 = arith.constant 0 : i32
    %c0_i32_1 = arith.constant 0 : i32
    return %c0_i32, %c0_i32_0 : i32, i32
  }
  func.func @transform_3(%arg0: i32, %arg1: i32) -> (i32, i32) {
    %c0_i32 = arith.constant 0 : i32
    %c0_i32_0 = arith.constant 0 : i32
    %c0_i32_1 = arith.constant 0 : i32
    return %c0_i32, %c0_i32_0 : i32, i32
  }
  func.func @transform_4(%arg0: i32, %arg1: i32) -> (i32, i32) {
    %c0_i32 = arith.constant 0 : i32
    %c0_i32_0 = arith.constant 0 : i32
    %c0_i32_1 = arith.constant 0 : i32
    return %c0_i32, %c0_i32_0 : i32, i32
  }
  func.func @transform_5(%arg0: i32, %arg1: i32) -> (i32, i32) {
    %c0_i32 = arith.constant 0 : i32
    %c0_i32_0 = arith.constant 0 : i32
    %c0_i32_1 = arith.constant 0 : i32
    return %c0_i32, %c0_i32_0 : i32, i32
  }
  func.func @transform_6(%arg0: i32, %arg1: i32) -> (i32, i32, i32) {
    %c0_i32 = arith.constant 0 : i32
    %c0_i32_0 = arith.constant 0 : i32
    return %arg0, %arg1, %c0_i32 : i32, i32, i32
  }
}

</mosaic_0001>

<bundles_post_ra>
// kernel: tpu_custom_call.1
= control target key start
LH: loop header
LB: loop body
LE: loop exit
PB: predicated region body
PF: predicated region fallthrough
CT: control target
= control target key end

     0   :  { %s1895_s0 = inlined_call_operand.hbm [shape: f32[2,16,64], index: 0, kind: input, shape index: {}]   ;;  %s1896_s1 = inlined_call_operand.hbm [shape: f32[2,1,4,64], index: 1, kind: input, shape index: {}]   ;;  %s1897_s2 = inlined_call_operand.hbm [shape: f32[192,256], index: 2, kind: input, shape index: {}]   ;;  %s1898_s3 = inlined_call_operand.hbm [shape: f32[384,128], index: 3, kind: input, shape index: {}]   ;;  %s1899_s4 = inlined_call_operand.vmem [shape: f32[1,128], index: 4, kind: input, shape index: {}]   ;;  %s1900_s5 = inlined_call_operand.vmem [shape: f32[1,128], index: 5, kind: input, shape index: {}]   ;;  %s1901_s6 = inlined_call_operand.hbm [shape: f32[2,16,128], index: 6, kind: output, shape index: {}]  }
   0x1   :  { %1910 = sst [smem:[#allocation19_spill]] %s1895_s0 }
   0x2   :  { %1911 = sst [smem:[#allocation20_spill]] %s1897_s2 }
   0x3   :  { %1912 = sst [smem:[#allocation21_spill]] %s1898_s3 }
   0x4   :  { %11 = vsyncpa [#allocation3], 0 }
   0x5   :  { %13 = vsyncpa [#allocation3 + $0x1], 0 }
   0x6   :  { %14 = vsyncpa [#allocation6], 0 }
   0x7   :  { %16 = vsyncpa [#allocation6 + $0x1], 0 }
   0x8   :  { %17 = vsyncpa [#allocation9], 0 }
   0x9   :  { %18 = vsyncpa [#allocation4], 0 }
   0xa   :  { %20 = vsyncpa [#allocation4 + $0x1], 0  ;;  %s1549_s21 = smov 0   ;;  %s1551_s22 = smov 0  }
   0xb   :  { %s1553_s23 = smov 0   ;;  %s1555_s24 = smov 0  }
   0xc   :  { %s1557_s25 = smov 0   ;;  %s1559_s26 = smov 0  }
   0xd LB: > { %1913 = sst [smem:[#allocation16_spill]] %s1488_s23  ;;  %s1580_s27 = sadd.s32 4294967295, %s1500_s26   ;;  %s1500_s26 = sphi %s1559_s26, %s26_s26   ;;  %s1496_s25 = sphi %s1557_s25, %s1944_s25   ;;  %s1492_s24 = sphi %s1555_s24, %s1943_s24   ;;  %s1488_s23 = sphi %s1553_s23, %s1939_s23   ;;  %s1484_s22 = sphi %s1551_s22, %s1942_s22   ;;  %s1480_s21 = sphi %s1549_s21, %s1941_s21  }
   0xe   : > { %s963_s28 = sadd.s32 4294967294, %s1500_s26   ;;  %p60_p0 = scmp.ne.s32.totalorder %s1484_s22, %s1480_s21 }
   0xf   : > { %p1902_p1 = scmp.eq.s32.totalorder %s1580_s27, 0  ;;  %p204_p3 = scmp.eq.s32.totalorder %s963_s28, 1 }
  0x10   : > { %p964_p5 = scmp.ge.s32.totalorder %s1500_s26, 1  ;;  %p211_p7 = scmp.lt.s32.totalorder %s1500_s26, 3 }
  0x11   : > { %p1589_p4 = por %p1902_p1, %p60_p0  ;;  %p1594_p6 = por %p204_p3, %p60_p0 }
  0x12   : > { %p1599_p8 = pnand %p964_p5, %p211_p7  ;;  %s1502_s8 = smov [#allocation7]  }
  0x13   : > { %s1914_s29 = scalar_select %p1589_p4, 1, 0 }
  0x14   : > { %s1915_s30 = scalar_select %p1594_p6, 1, 0 }
  0x15   : > { %s1916_s7 = scalar_select %p1599_p8, 1, 0 }
  0x16   : > { %s223_s9 = sshll.u32 %s1502_s8, 4  ;;  %p1209_p9 = pneg %p1599_p8  ;;  %s1603_s9 = int_to_ptr.vmem [resolvable:$true] %s223_s9 }
  0x17   : > { %s1503_s11 = smov [#allocation8]   ;;  %s1918_s2 = sld [smem:[#allocation20_spill]] }
  0x18   : > { %p1610_p11 = pnand %p1209_p9, %p1902_p1  ;;  %s236_s12 = sshll.u32 %s1503_s11, 4  ;;  %s1614_s12 = int_to_ptr.vmem [resolvable:$true] %s236_s12 }
  0x1a   : > { %p1292_p13 = pneg %p1610_p11 }
  0x1d   : > { %s1290_s15 = scalar_lea.hbm %s1918_s2, 6144 }
  0x1e   : > { %p1291_p12 = scmp.ne.s32.totalorder %s1918_s2, %s1290_s15  ;;  %p1297_p5 = scmp.lt.u32.totalorder %s1290_s15, %s1918_s2 }
  0x20   : > { %p1293_p0 = pnand %p1292_p13, %p1291_p12 }
  0x22   : > { %p1294_p3 = pneg %p1293_p0 }
  0x24   : > { %p1299_p7 = pnand %p1297_p5, %p1294_p3 }
  0x26   : > { %1302 = shalt.err (!%p1299_p7)
}
  0x27   : > { %s1303_s20 = scalar_lea.vmem %s1603_s9, 6144  ;;  %p1311_p2 = scmp.lt.s32.totalorder %s1603_s9, %s1603_s9 }
  0x28   : > { %p1304_p9 = scmp.ne.s32.totalorder %s1603_s9, %s1303_s20  ;;  %p1312_p12 = scmp.lt.s32.totalorder %s1303_s20, %s1303_s20 }
  0x2a   : > { %p1306_p10 = pnand %p1304_p9, %p1292_p13  ;;  %p1313_p0 = por %p1312_p12, %p1311_p2 }
  0x2c   : > { %p1307_p1 = pneg %p1306_p10 }
  0x2e   : > { %p1314_p6 = pnand %p1313_p0, %p1307_p1 }
  0x30   : > { %1317 = shalt.err (!%p1314_p6)
}
  0x31   : > { %s1504_s28 = smov 256   ;;  %s1505_s8 = smov 16  }
  0x32   : > { %1212 = dma.hbm_to_vmem [thread:$0]  (!%p1610_p11), %s1918_s2, 6144, %s1603_s9, [#allocation6], %s1504_s28, %s1504_s28, %s1505_s8  }
  0x33   : > { %s1919_s3 = sld [smem:[#allocation21_spill]] }
  0x39   : > { %s1318_s16 = scalar_lea.hbm %s1919_s3, 6144 }
  0x3a   : > { %p1319_p2 = scmp.ne.s32.totalorder %s1919_s3, %s1318_s16  ;;  %p1325_p10 = scmp.lt.u32.totalorder %s1318_s16, %s1919_s3 }
  0x3c   : > { %p1321_p1 = pnand %p1319_p2, %p1292_p13 }
  0x3e   : > { %p1322_p6 = pneg %p1321_p1 }
  0x40   : > { %p1327_p3 = pnand %p1325_p10, %p1322_p6 }
  0x42   : > { %1330 = shalt.err (!%p1327_p3)
}
  0x43   : > { %s1331_s9 = scalar_lea.vmem %s1614_s12, 6144  ;;  %p1339_p12 = scmp.lt.s32.totalorder %s1614_s12, %s1614_s12 }
  0x44   : > { %p1332_p5 = scmp.ne.s32.totalorder %s1614_s12, %s1331_s9  ;;  %p1340_p0 = scmp.lt.s32.totalorder %s1331_s9, %s1331_s9 }
  0x46   : > { %p1334_p7 = pnand %p1332_p5, %p1292_p13  ;;  %p1341_p2 = por %p1340_p0, %p1339_p12 }
  0x48   : > { %p1335_p9 = pneg %p1334_p7 }
  0x4a   : > { %p1342_p1 = pnand %p1341_p2, %p1335_p9 }
  0x4c   : > { %1345 = shalt.err (!%p1342_p1)
}
  0x4d   : > { %s1903_s28 = smov 128   ;;  %s1904_s8 = smov 8  }
  0x4e   : > { %1215 = dma.hbm_to_vmem [thread:$0]  (!%p1610_p11), %s1919_s3, 6144, %s1614_s12, [#allocation9], %s1903_s28, %s1903_s28, %s1904_s8  }
  0x4f   : > { %s38_s14 = sadd.s32 1, %s1496_s25  ;;  %s47_s15 = sadd.s32 1, %s1488_s23 }
  0x50   : > { %p40_p13 = scmp.ge.s32.totalorder %s38_s14, 2  ;;  %p54_p6 = scmp.ne.s32.totalorder %s1488_s23, %s1484_s22 }
  0x51   : > { %p55_p10 = scmp.eq.s32.totalorder %s1500_s26, 0  ;;  %p1229_p3 = scmp.lt.s32.totalorder %s1500_s26, 2 }
  0x52   : > { %s1946_s14 = smov (%p40_p13, %s38_s14), 0  ;;  %p1921_p7 = scmp.eq.s32.totalorder %s1580_s27, 1 }
  0x53   : > { %1920 = sst [smem:[#allocation17_spill]] %s1946_s14  ;;  %p56_p5 = por %p55_p10, %p54_p6 }
  0x54   : > { %p1681_p9 = por %p1921_p7, %p54_p6  ;;  %s42_s16 = ssub.s32 %s1496_s25, %s1946_s14 }
  0x55   : > { %s1688_s17 = sand.u32 1, %s1488_s23   ;;  %p45_p11 = scmp.eq.s32.totalorder %s42_s16, 0 }
  0x56   : > { %s1922_s10 = scalar_select %p1681_p9, 1, 0 }
  0x57   : > { %s968_s12 = sshll.u32 %s1688_s17, 4  ;;  %s990_s18 = sshll.u32 %s1496_s25, 8 }
  0x58   : > { %s1693_s19 = scalar_select %p45_p11, %s1488_s23, %s47_s15  }
  0x59   : > { %s1924_s0 = sld [smem:[#allocation19_spill]]  ;;  %s260_s13 = scalar_lea.vmem [#allocation2], %s968_s12 }
  0x5a   : > { %1923 = sst [smem:[#allocation18_spill]] %s1693_s19  ;;  %s269_s28 = sshll.u32 %s260_s13, 4  ;;  %s1706_s28 = int_to_ptr.vmem [resolvable:$true] %s269_s28 }
  0x5b   : > { %p1702_p12 = pnand %p1229_p3, %p56_p5  ;;  %s257_s16 = scalar_lea.sflag [#allocation3], %s1688_s17 }
  0x5d   : > { %p1348_p2 = pneg %p1702_p12 }
  0x5f   : > { %s1698_s11 = scalar_lea.hbm %s1924_s0, %s990_s18  ;;  %s1351_s9 = scalar_lea.hbm %s1924_s0, 512 }
  0x60   : > { %s1346_s20 = scalar_lea.hbm %s1698_s11, 256  ;;  %p1352_p6 = scmp.lt.u32.totalorder %s1698_s11, %s1924_s0 }
  0x61   : > { %p1347_p0 = scmp.ne.s32.totalorder %s1698_s11, %s1346_s20  ;;  %p1353_p10 = scmp.lt.u32.totalorder %s1351_s9, %s1346_s20 }
  0x62   : > { %p1355_p5 = scmp.lt.u32.totalorder %s1346_s20, %s1698_s11 }
  0x63   : > { %p1349_p1 = pnand %p1348_p2, %p1347_p0  ;;  %p1354_p3 = por %p1353_p10, %p1352_p6 }
  0x65   : > { %p1350_p13 = pneg %p1349_p1  ;;  %p1356_p7 = por %p1355_p5, %p1354_p3 }
  0x67   : > { %p1357_p11 = pnand %p1356_p7, %p1350_p13 }
  0x69   : > { %1360 = shalt.err (!%p1357_p11)
}
  0x6a   : > { %s1361_s15 = scalar_lea.vmem %s1706_s28, 256  ;;  %s1508_s12 = smov [#allocation2]  }
  0x6b   : > { %p1362_p0 = scmp.ne.s32.totalorder %s1706_s28, %s1361_s15  ;;  %s1366_s18 = sshll.u32 %s1508_s12, 4  ;;  %s1367_s18 = int_to_ptr.vmem [resolvable:$false] %s1366_s18 }
  0x6c   : > { %s1368_s2 = scalar_lea.vmem %s1367_s18, 512  ;;  %p1369_p4 = scmp.lt.s32.totalorder %s1706_s28, %s1367_s18 }
  0x6d   : > { %p1364_p1 = pnand %p1362_p0, %p1348_p2  ;;  %p1370_p6 = scmp.lt.s32.totalorder %s1368_s2, %s1361_s15 }
  0x6f   : > { %p1365_p9 = pneg %p1364_p1  ;;  %p1371_p10 = por %p1370_p6, %p1369_p4 }
  0x71   : > { %p1372_p3 = pnand %p1371_p10, %p1365_p9 }
  0x73   : > { %1375 = shalt.err (!%p1372_p3)
}
  0x74   : > { %s1926_s20 = smov 8   ;;  %s1927_s9 = smov 128  }
  0x75   : > { %1219 = dma.hbm_to_vmem [thread:$0]  (!%p1702_p12), %s1698_s11, 256, %s1706_s28, %s257_s16, %s1927_s9, %s1927_s9, %s1926_s20  }
  0x76   : > { %s971_s13 = sshll.u32 %s1688_s17, 2  ;;  %s972_s12 = sshll.u32 %s1496_s25, 6 }
  0x77   : > { %s1745_s2 = scalar_lea.hbm %s1896_s1, %s972_s12  ;;  %s283_s0 = scalar_lea.vmem [#allocation5], %s971_s13 }
  0x78   : > { %s291_s3 = sshll.u32 %s283_s0, 4  ;;  %s1928_s14 = sand.u32 1, %s1500_s26   ;;  %s292_s3 = int_to_ptr.vmem [resolvable:$true] %s291_s3 }
  0x79   : > { %s280_s19 = scalar_lea.sflag [#allocation6], %s1928_s14  ;;  %s1376_s23 = scalar_lea.hbm %s1745_s2, 64 }
  0x7a   : > { %p1377_p4 = scmp.ne.s32.totalorder %s1745_s2, %s1376_s23  ;;  %s1381_s11 = scalar_lea.hbm %s1896_s1, 128 }
  0x7b   : > { %p1382_p5 = scmp.lt.u32.totalorder %s1745_s2, %s1896_s1  ;;  %p1383_p7 = scmp.lt.u32.totalorder %s1381_s11, %s1376_s23 }
  0x7c   : > { %p1379_p9 = pnand %p1377_p4, %p1348_p2  ;;  %p1385_p0 = scmp.lt.u32.totalorder %s1376_s23, %s1745_s2 }
  0x7d   : > { %p1384_p11 = por %p1383_p7, %p1382_p5 }
  0x7e   : > { %p1380_p13 = pneg %p1379_p9 }
  0x7f   : > { %p1386_p1 = por %p1385_p0, %p1384_p11 }
  0x81   : > { %p1387_p6 = pnand %p1386_p1, %p1380_p13 }
  0x83   : > { %1390 = shalt.err (!%p1387_p6)
}
  0x84   : > { %s1391_s0 = scalar_lea.vmem %s292_s3, 64  ;;  %s1509_s14 = smov [#allocation5]  }
  0x85   : > { %p1392_p10 = scmp.ne.s32.totalorder %s292_s3, %s1391_s0  ;;  %s1396_s9 = sshll.u32 %s1509_s14, 4  ;;  %s1397_s9 = int_to_ptr.vmem [resolvable:$false] %s1396_s9 }
  0x86   : > { %s1398_s13 = scalar_lea.vmem %s1397_s9, 128  ;;  %p1399_p9 = scmp.lt.s32.totalorder %s292_s3, %s1397_s9 }
  0x87   : > { %p1394_p3 = pnand %p1392_p10, %p1348_p2  ;;  %p1400_p8 = scmp.lt.s32.totalorder %s1398_s13, %s1391_s0 }
  0x89   : > { %p1395_p4 = pneg %p1394_p3  ;;  %p1401_p5 = por %p1400_p8, %p1399_p9 }
  0x8b   : > { %p1402_p7 = pnand %p1401_p5, %p1395_p4 }
  0x8d   : > { %1405 = shalt.err (!%p1402_p7)
}
  0x8e   : > { %1222 = dma.hbm_to_vmem [thread:$0]  (!%p1702_p12), %s1745_s2, 64, %s292_s3, %s280_s19  }
  0x8f   : > { %p1929_p13 = scmp.ne.s32.totalorder %s1916_s7, 0 }
  0x90   : > { %s1771_s23 = sand.u32 (!%p1929_p13), 1, %s1484_s22   ;;  %p1930_p8 = scmp.ne.s32.totalorder (!%p1929_p13), %s1914_s29, 0 }
  0x91   : > { %300 = sbr.rel (%p1929_p13) target bundleno = 776 (0x308), region = 44  ;;  %s974_s12 = sshll.u32 (!%p1929_p13), %s1771_s23, 4 }
  0x92   : > { %s303_s15 = scalar_lea.sflag (!%p1929_p13), [#allocation3], %s1771_s23  ;;  %s306_s18 = scalar_lea.vmem (!%p1929_p13), [#allocation2], %s974_s12 }
  0x98   : > { %1459 = dma.done.wait (%p1930_p8), %s303_s15, 256  }
  0x99   : > { %1461 = vsyncadd (%p1930_p8), %s303_s15, 4294967040  ;;  %s311_s3 = sand.u32 1, %s1580_s27   ;;  %s975_s7 = sshll.u32 %s1771_s23, 2 }
  0x9a   : > { %s312_s8 = scalar_lea.sflag [#allocation6], %s311_s3  ;;  %s315_s19 = scalar_lea.vmem [#allocation5], %s975_s7 }
  0x9b   : > { %1463 = dma.done.wait (%p1930_p8), %s312_s8, 64  }
  0x9c   : > { %1465 = vsyncadd (%p1930_p8), %s312_s8, 4294967232  ;;  %p1931_p12 = scmp.eq.s32.totalorder %s1580_s27, 0 }
  0x9e   : > { %1467 = dma.done.wait (%p1931_p12), [#allocation6], 6144   ;;  %p1932_p2 = pmov %p1931_p12 }
  0xa0   : > { %1469 = vsyncadd (%p1932_p2), [#allocation6], 4294961152  ;;  %p1933_p11 = pmov %p1932_p2 }
  0xa1   : > { %p1934_p0 = pmov %p1932_p2 }
  0xa2   : > { %1471 = dma.done.wait (%p1933_p11), [#allocation9], 6144  }
  0xa3   : > { %1473 = vsyncadd (%p1934_p0), [#allocation9], 4294961152  ;;  %v360_v0 = vld [vmem:[%s306_s18] sm:$0xff]  ;;  %v361_v1 = vld [vmem:[%s306_s18 + $0x8] sm:$0xff]  ;;  %vm365_vm0 = vcmask 1041408   ;;  %vm376_vm1 = vcmask 1046528  }
  0xa4   : > { %v362_v2 = vld [vmem:[%s315_s19] sm:$0xf]  ;;  %v366_v3 = vrot.slane %v360_v0, 6  ;;  %v367_v4 = vrot.slane %v361_v1, 6  ;;  %v402_v5 = vld [vmem:[#allocation7 + $0x8] sm:$0xff]  ;;  %v401_v7 = vld [vmem:[#allocation7] sm:$0xff] }
  0xa5   : > { %v404_v6 = vld [vmem:[#allocation7 + $0x18] sm:$0xff]  ;;  %v403_v9 = vld [vmem:[#allocation7 + $0x10] sm:$0xff]  ;;  %v406_v10 = vld [vmem:[#allocation7 + $0x28] sm:$0xff]  ;;  %vm391_vm2 = vcmask 1045504   ;;  %s1510_s27 = smov 64   ;;  %vm397_vm3 = vcmask 523264  }
  0xa6   : > { %v1083_v8 = vpack.c.bf16 %v404_v6, %v402_v5  ;;  %v408_v11 = vld [vmem:[#allocation7 + $0x38] sm:$0xff]  ;;  %v1795_v12 = vsel %vm365_vm0, %v366_v3, %v367_v4  ;;  %v1797_v13 = vsel %vm365_vm0, %v362_v2, %v366_v3  ;;  %v1799_v14 = vsel %vm365_vm0, %v367_v4, %v362_v2  ;;  %v405_v16 = vld [vmem:[#allocation7 + $0x20] sm:$0xff]  ;;  %v407_v17 = vld [vmem:[#allocation7 + $0x30] sm:$0xff]  ;;  %s356_s11 = scalar_lea.vmem [#allocation10], %s974_s12  ;;  %s991_s20 = sshll.u32 %s1492_s24, 8 }
  0xa7   : > { %v1085_v15 = vpack.c.bf16 %v403_v9, %v401_v7  ;;  %v410_v18 = vld [vmem:[#allocation7 + $0x48] sm:$0xff]  ;;  %v377_v19 = vrot.slane %v1797_v13, 1  ;;  %v378_v20 = vrot.slane %v1795_v12, 1  ;;  %v380_v21 = vrot.slane %v1799_v14, 1  ;;  %v412_v23 = vld [vmem:[#allocation7 + $0x58] sm:$0xff]  ;;  %v409_v28 = vld [vmem:[#allocation7 + $0x40] sm:$0xff]  ;;  %s1846_s9 = scalar_lea.hbm %s1901_s6, %s991_s20 }
  0xa8   : > { %1084 = vmatprep.subr.bf16.mxu0 %v1083_v8  ;;  %v1087_v22 = vpack.c.bf16 %v408_v11, %v406_v10  ;;  %v1089_v24 = vpack.c.bf16 %v407_v17, %v405_v16  ;;  %v392_v25 = vrot.slane %v1797_v13, 2  ;;  %v1091_v27 = vpack.c.bf16 %v412_v23, %v410_v18  ;;  %v411_v29 = vld [vmem:[#allocation7 + $0x50] sm:$0xff]  ;;  %v414_v31 = vld [vmem:[#allocation7 + $0x68] sm:$0xff]  ;;  %v416_v32 = vld [vmem:[#allocation7 + $0x78] sm:$0xff]  ;;  %s832_s16 = sshll.u32 %s356_s11, 4  ;;  %s817_s13 = scalar_lea.sflag [#allocation4], %s1771_s23  ;;  %s1841_s16 = int_to_ptr.vmem [resolvable:$true] %s832_s16 }
  0xa9   : > { %1086 = vmatpush1.bf16.msra.mxu0 %v1085_v15  ;;  %v379_v26 = vsel %vm376_vm1, %v377_v19, %v378_v20  ;;  %386 = vrot.lane.b32.xlu1 %v380_v21, %s1510_s27  ;;  %v393_v30 = vrot.slane %v1795_v12, 2  ;;  %v381_v33 = vsel %vm376_vm1, %v378_v20, %v380_v21  ;;  %v1093_v35 = vpack.c.bf16 %v411_v29, %v409_v28  ;;  %v413_v37 = vld [vmem:[#allocation7 + $0x60] sm:$0xff]  ;;  %v415_v38 = vld [vmem:[#allocation7 + $0x70] sm:$0xff]  ;;  %v418_v39 = vld [vmem:[#allocation7 + $0x88] sm:$0xff]  ;;  %s1406_s12 = scalar_lea.vmem %s1841_s16, 256  ;;  %p1935_p6 = scmp.ne.s32.totalorder %s1922_s10, 0 }
  0xaa   : > { %1088 = vmatprep.subr.bf16.mxu0 %v1087_v22  ;;  %382 = vrot.lane.b32.xlu0 %v379_v26, %s1510_s27  ;;  %v1095_v36 = vpack.c.bf16 %v416_v32, %v414_v31  ;;  %v420_v40 = vld [vmem:[#allocation7 + $0x98] sm:$0xff]  ;;  %v1097_v41 = vpack.c.bf16 %v415_v38, %v413_v37  ;;  %v417_v43 = vld [vmem:[#allocation7 + $0x80] sm:$0xff]  ;;  %v419_v44 = vld [vmem:[#allocation7 + $0x90] sm:$0xff]  ;;  %p1407_p1 = scmp.ne.s32.totalorder %s1841_s16, %s1406_s12  ;;  %s1511_s24 = smov [#allocation10]  }
  0xab   : > { %v394_v34 = vsel %vm391_vm2, %v392_v25, %v393_v30  ;;  %v1099_v42 = vpack.c.bf16 %v420_v40, %v418_v39  ;;  %v422_v45 = vld [vmem:[#allocation7 + $0xa8] sm:$0xff]  ;;  %v424_v46 = vld [vmem:[#allocation7 + $0xb8] sm:$0xff]  ;;  %v421_v47 = vld [vmem:[#allocation7 + $0xa0] sm:$0xff]  ;;  %v1101_v49 = vpack.c.bf16 %v419_v44, %v417_v43  ;;  %s1410_s15 = sshll.u32 %s1511_s24, 4  ;;  %s1411_s15 = int_to_ptr.vmem [resolvable:$false] %s1410_s15 }
  0xac   : > { %979 = vmatprep.mubr.msk.f32.mxu0 %vm397_vm3, %v394_v34  ;;  %v423_v48 = vld [vmem:[#allocation7 + $0xb0] sm:$0xff]  ;;  %v426_v50 = vld [vmem:[#allocation7 + $0xc8] sm:$0xff]  ;;  %v428_v51 = vld [vmem:[#allocation7 + $0xd8] sm:$0xff]  ;;  %v1103_v55 = vpack.c.bf16 %v424_v46, %v422_v45  ;;  %p1408_p10 = pnand %p1407_p1, %p1935_p6  ;;  %s1412_s18 = scalar_lea.vmem %s1411_s15, 512 }
  0xad   : > { %1090 = vmatpush1.bf16.msra.mxu0 %v1089_v24  ;;  %v611_v52 = vld [vmem:[#allocation8 + $0x80] sm:$0xff]  ;;  %v612_v53 = vld [vmem:[#allocation8 + $0x88] sm:$0xff]  ;;  %v613_v58 = vld [vmem:[#allocation8 + $0x90] sm:$0xff]  ;;  %v1105_v2 = vpack.c.bf16 %v423_v48, %v421_v47  ;;  %v1107_v6 = vpack.c.bf16 %v428_v51, %v426_v50  ;;  %p1413_p4 = scmp.lt.s32.totalorder %s1841_s16, %s1411_s15  ;;  %p1414_p9 = scmp.lt.s32.totalorder %s1412_s18, %s1406_s12 }
  0xae   : > { %1092 = vmatprep.subr.bf16.mxu0 %v1091_v27  ;;  %384 = vrot.lane.b32.xlu0 %v381_v33, %s1510_s27  ;;  %v595_v54 = vld [vmem:[#allocation8] sm:$0xff]  ;;  %v1131_v56 = vpack.c.bf16 %v612_v53, %v611_v52  ;;  %v596_v57 = vld [vmem:[#allocation8 + $0x8] sm:$0xff]  ;;  %v614_v59 = vld [vmem:[#allocation8 + $0x98] sm:$0xff]  ;;  %p1409_p3 = pneg %p1408_p10 }
  0xaf   : > { %v1133_v60 = vpack.c.bf16 %v596_v57, %v595_v54  ;;  %v1135_v61 = vpack.c.bf16 %v614_v59, %v613_v58  ;;  %v597_v62 = vld [vmem:[#allocation8 + $0x10] sm:$0xff]  ;;  %v598_v63 = vld [vmem:[#allocation8 + $0x18] sm:$0xff]  ;;  %v615_v0 = vld [vmem:[#allocation8 + $0xa0] sm:$0xff]  ;;  %v395_v58 = vrot.slane %v1799_v14, 2  ;;  %p1415_p5 = por %p1414_p9, %p1413_p4 }
  0xb0   : > { %1132 = vmatprep.subr.bf16.mxu1 %v1131_v56  ;;  %v616_v1 = vld [vmem:[#allocation8 + $0xa8] sm:$0xff]  ;;  %v425_v3 = vld [vmem:[#allocation7 + $0xc0] sm:$0xff]  ;;  %v427_v4 = vld [vmem:[#allocation7 + $0xd0] sm:$0xff]  ;;  %v1137_v5 = vpack.c.bf16 %v598_v63, %v597_v62 }
  0xb1   : > { %1094 = vmatpush1.bf16.msra.mxu0 %v1093_v35  ;;  %1134 = vmatpush3.bf16.msra.mxu1 %v1133_v60  ;;  %v430_v7 = vld [vmem:[#allocation7 + $0xe8] sm:$0xff]  ;;  %v1139_v8 = vpack.c.bf16 %v616_v1, %v615_v0  ;;  %v599_v9 = vld [vmem:[#allocation8 + $0x20] sm:$0xff]  ;;  %v432_v11 = vld [vmem:[#allocation7 + $0xf8] sm:$0xff]  ;;  %v1109_v17 = vpack.c.bf16 %v427_v4, %v425_v3  ;;  %v396_v60 = vsel %vm391_vm2, %v393_v30, %v395_v58  ;;  %p1416_p7 = pnand %p1415_p5, %p1409_p3 }
  0xb2   : > { %1096 = vmatprep.subr.bf16.mxu0 %v1095_v36  ;;  %1136 = vmatprep.subr.bf16.mxu1 %v1135_v61  ;;  %v600_v10 = vld [vmem:[#allocation8 + $0x28] sm:$0xff]  ;;  %v617_v15 = vld [vmem:[#allocation8 + $0xb0] sm:$0xff]  ;;  %v618_v16 = vld [vmem:[#allocation8 + $0xb8] sm:$0xff]  ;;  %v1111_v21 = vpack.c.bf16 %v432_v11, %v430_v7 }
  0xb3   : > { %v429_v18 = vld [vmem:[#allocation7 + $0xe0] sm:$0xff]  ;;  %v431_v19 = vld [vmem:[#allocation7 + $0xf0] sm:$0xff]  ;;  %v1141_v20 = vpack.c.bf16 %v600_v10, %v599_v9  ;;  %v434_v22 = vld [vmem:[#allocation7 + $0x108] sm:$0xff]  ;;  %v1143_v23 = vpack.c.bf16 %v618_v16, %v617_v15 }
  0xb4   : > { %v601_v24 = vld [vmem:[#allocation8 + $0x30] sm:$0xff]  ;;  %v602_v25 = vld [vmem:[#allocation8 + $0x38] sm:$0xff]  ;;  %v619_v27 = vld [vmem:[#allocation8 + $0xc0] sm:$0xff]  ;;  %v1113_v29 = vpack.c.bf16 %v431_v19, %v429_v18 }
  0xb5   : > { %1098 = vmatpush1.bf16.msra.mxu0 %v1097_v41  ;;  %1138 = vmatpush3.bf16.msra.mxu1 %v1137_v5  ;;  %v436_v26 = vld [vmem:[#allocation7 + $0x118] sm:$0xff]  ;;  %v620_v28 = vld [vmem:[#allocation8 + $0xc8] sm:$0xff]  ;;  %v433_v31 = vld [vmem:[#allocation7 + $0x100] sm:$0xff]  ;;  %v1145_v32 = vpack.c.bf16 %v602_v25, %v601_v24 }
  0xb6   : > { %1100 = vmatprep.subr.bf16.mxu0 %v1099_v42  ;;  %1140 = vmatprep.subr.bf16.mxu1 %v1139_v8  ;;  %v1115_v33 = vpack.c.bf16 %v436_v26, %v434_v22  ;;  %v435_v34 = vld [vmem:[#allocation7 + $0x110] sm:$0xff]  ;;  %v1147_v35 = vpack.c.bf16 %v620_v28, %v619_v27  ;;  %v603_v36 = vld [vmem:[#allocation8 + $0x40] sm:$0xff]  ;;  %v604_v37 = vld [vmem:[#allocation8 + $0x48] sm:$0xff]  ;;  %v552_v22 = vlaneseq }
  0xb7   : > { %v438_v38 = vld [vmem:[#allocation7 + $0x128] sm:$0xff]  ;;  %v440_v39 = vld [vmem:[#allocation7 + $0x138] sm:$0xff]  ;;  %v1117_v40 = vpack.c.bf16 %v435_v34, %v433_v31  ;;  %v1149_v41 = vpack.c.bf16 %v604_v37, %v603_v36  ;;  %v437_v43 = vld [vmem:[#allocation7 + $0x120] sm:$0xff] }
  0xb8   : > { %v1119_v42 = vpack.c.bf16 %v440_v39, %v438_v38  ;;  %v439_v44 = vld [vmem:[#allocation7 + $0x130] sm:$0xff]  ;;  %v442_v45 = vld [vmem:[#allocation7 + $0x148] sm:$0xff]  ;;  %v444_v46 = vld [vmem:[#allocation7 + $0x158] sm:$0xff] }
  0xb9   : > { %1102 = vmatpush1.bf16.msra.mxu0 %v1101_v49  ;;  %1142 = vmatpush3.bf16.msra.mxu1 %v1141_v20  ;;  %v1121_v47 = vpack.c.bf16 %v439_v44, %v437_v43  ;;  %v1123_v48 = vpack.c.bf16 %v444_v46, %v442_v45  ;;  %v441_v49 = vld [vmem:[#allocation7 + $0x140] sm:$0xff]  ;;  %v443_v50 = vld [vmem:[#allocation7 + $0x150] sm:$0xff]  ;;  %v446_v51 = vld [vmem:[#allocation7 + $0x168] sm:$0xff] }
  0xba   : > { %1104 = vmatprep.subr.bf16.mxu0 %v1103_v55  ;;  %1144 = vmatprep.subr.bf16.mxu1 %v1143_v23  ;;  %v448_v52 = vld [vmem:[#allocation7 + $0x178] sm:$0xff]  ;;  %v1125_v53 = vpack.c.bf16 %v443_v50, %v441_v49  ;;  %v445_v55 = vld [vmem:[#allocation7 + $0x160] sm:$0xff]  ;;  %v447_v56 = vld [vmem:[#allocation7 + $0x170] sm:$0xff]  ;;  %v553_v23 = vshrl.u32 %v552_v22, 7 }
  0xbb   : > { %v1127_v54 = vpack.c.bf16 %v448_v52, %v446_v51  ;;  %v1129_v57 = vpack.c.bf16 %v447_v56, %v445_v55  ;;  %v622_v30 = vld [vmem:[#allocation8 + $0xd8] sm:$0xff]  ;;  %v605_v4 = vld [vmem:[#allocation8 + $0x50] sm:$0xff]  ;;  %v624_v7 = vld [vmem:[#allocation8 + $0xe8] sm:$0xff] }
  0xbc   : > { %v607_v9 = vld [vmem:[#allocation8 + $0x60] sm:$0xff]  ;;  %v625_v11 = vld [vmem:[#allocation8 + $0xf0] sm:$0xff]  ;;  %v626_v15 = vld [vmem:[#allocation8 + $0xf8] sm:$0xff]  ;;  %v557_v25 = vadd.s32 4294967295, %v553_v23 }
  0xbd   : > { %1106 = vmatpush1.bf16.msra.mxu0 %v1105_v2  ;;  %1146 = vmatpush3.bf16.msra.mxu1 %v1145_v32  ;;  %v621_v2 = vld [vmem:[#allocation8 + $0xd0] sm:$0xff]  ;;  %v627_v19 = vld [vmem:[#allocation8 + $0x100] sm:$0xff]  ;;  %v628_v20 = vld [vmem:[#allocation8 + $0x108] sm:$0xff] }
  0xbe   : > { %1108 = vmatprep.subr.bf16.mxu0 %v1107_v6  ;;  %1148 = vmatprep.subr.bf16.mxu1 %v1147_v35  ;;  %v1151_v3 = vpack.c.bf16 %v622_v30, %v621_v2  ;;  %v623_v6 = vld [vmem:[#allocation8 + $0xe0] sm:$0xff]  ;;  %v609_v16 = vld [vmem:[#allocation8 + $0x70] sm:$0xff]  ;;  %v982_v24 = vld [vmem:[%s1899_s4] ss:$0 sm:$0xff]  ;;  %vm560_vm4 = vcmp.ge.s32.totalorder %v557_v25, 0 }
  0xbf   : > { %v1155_v8 = vpack.c.bf16 %v624_v7, %v623_v6  ;;  %v630_v43 = vld [vmem:[#allocation8 + $0x118] sm:$0xff]  ;;  %v631_v55 = vld [vmem:[#allocation8 + $0x120] sm:$0xff]  ;;  %v632_v56 = vld [vmem:[#allocation8 + $0x128] sm:$0xff] }
  0xc0   : > { %v635_v30 = vld [vmem:[#allocation8 + $0x140] sm:$0xff] }
  0xc1   : > { %1110 = vmatpush1.bf16.msra.mxu0 %v1109_v17  ;;  %1150 = vmatpush3.bf16.msra.mxu1 %v1149_v41  ;;  %v610_v17 = vld [vmem:[#allocation8 + $0x78] sm:$0xff]  ;;  %v639_v7 = vld [vmem:[#allocation8 + $0x160] sm:$0xff] }
  0xc2   : > { %1112 = vmatprep.subr.bf16.mxu0 %v1111_v21  ;;  %1152 = vmatprep.subr.bf16.mxu1 %v1151_v3  ;;  %v1161_v18 = vpack.c.bf16 %v610_v17, %v609_v16  ;;  %v1163_v21 = vpack.c.bf16 %v628_v20, %v627_v19  ;;  %v636_v3 = vld [vmem:[#allocation8 + $0x148] sm:$0xff] }
  0xc5   : > { %1114 = vmatpush1.bf16.msra.mxu0 %v1113_v29  ;;  %v555_v29 = vadd.s32 16, %v553_v23  ;;  %v984_v23 = vld [vmem:[%s1900_s5] ss:$0 sm:$0xff] }
  0xc6   : > { %1116 = vmatprep.subr.bf16.mxu0 %v1115_v33 }
  0xc7   : > { %v559_v38 = vadd.s32 4294967295, %v555_v29 }
  0xc9   : > { %1118 = vmatpush1.bf16.msra.mxu0 %v1117_v40  ;;  %vm565_vm5 = vcmp.lt.s32.totalorder %v559_v38, 16 }
  0xca   : > { %1120 = vmatprep.subr.bf16.mxu0 %v1119_v42  ;;  %v629_v42 = vld [vmem:[#allocation8 + $0x110] sm:$0xff] }
  0xcd   : > { %1122 = vmatpush1.bf16.msra.mxu0 %v1121_v47 }
  0xce   : > { %1124 = vmatprep.subr.bf16.mxu0 %v1123_v48 }
  0xd1   : > { %1126 = vmatpush1.bf16.msra.mxu0 %v1125_v53  ;;  %v1167_v53 = vpack.c.bf16 %v630_v43, %v629_v42 }
  0xd2   : > { %1128 = vmatprep.subr.bf16.mxu0 %v1127_v54 }
  0xd5   : > { %1130 = vmatpush1.bf16.msra.mxu0 %v1129_v57 }
 0x11b   : > { %v387_v63 = vpop.permute.xlu1 %386 }
 0x11c   : > { %v383_v59 = vpop.permute.xlu0 %382  ;;  %v400_v1 = vsel %vm397_vm3, %v1799_v14, %v387_v63  ;;  %v1159_v14 = vpack.c.bf16 %v626_v15, %v625_v11  ;;  %v633_v63 = vld [vmem:[#allocation8 + $0x130] sm:$0xff] }
 0x11d   : > { %v398_v61 = vsel %vm397_vm3, %v1797_v13, %v383_v59  ;;  %v606_v13 = vld [vmem:[#allocation8 + $0x58] sm:$0xff] }
 0x11e   : > { %520 = vmatmul.mubr.f32.vlgmr.msra.gmra.mrb[0].mxu0 %v398_v61  ;;  %v1153_v5 = vpack.c.bf16 %v606_v13, %v605_v4  ;;  %v1171_v61 = vpack.c.bf16 %v632_v56, %v631_v55  ;;  %v1179_v4 = vpack.c.bf16 %v636_v3, %v635_v30  ;;  %v637_v13 = vld [vmem:[#allocation8 + $0x150] sm:$0xff] }
 0x11f   : > { %980 = vmatprep.mubr.msk.f32.mxu0 %vm397_vm3, %v396_v60 }
 0x120   : > { %v385_v62 = vpop.permute.xlu0 %384  ;;  %1154 = vmatpush3.bf16.msra.mxu1 %v1153_v5  ;;  %v638_v5 = vld [vmem:[#allocation8 + $0x158] sm:$0xff] }
 0x121   : > { %v399_v0 = vsel %vm397_vm3, %v1795_v12, %v385_v62  ;;  %v608_v12 = vld [vmem:[#allocation8 + $0x68] sm:$0xff]  ;;  %1156 = vmatprep.subr.bf16.mxu1 %v1155_v8  ;;  %v1183_v6 = vpack.c.bf16 %v638_v5, %v637_v13 }
 0x122   : > { %526 = vmatmul.mubr.f32.gmra.mrb[2].mxu0 %v399_v0  ;;  %v1157_v10 = vpack.c.bf16 %v608_v12, %v607_v9  ;;  %v634_v0 = vld [vmem:[#allocation8 + $0x138] sm:$0xff]  ;;  %v640_v8 = vld [vmem:[#allocation8 + $0x168] sm:$0xff]  ;;  %v641_v12 = vld [vmem:[#allocation8 + $0x170] sm:$0xff] }
 0x123   : > { %981 = vmatprep.mubr.msk.f32.mxu0 %vm397_vm3, %v395_v58  ;;  %v1175_v2 = vpack.c.bf16 %v634_v0, %v633_v63  ;;  %v1187_v9 = vpack.c.bf16 %v640_v8, %v639_v7 }
 0x124   : > { %1158 = vmatpush3.bf16.msra.mxu1 %v1157_v10  ;;  %v642_v10 = vld [vmem:[#allocation8 + $0x178] sm:$0xff] }
 0x125   : > { %1160 = vmatprep.subr.bf16.mxu1 %v1159_v14  ;;  %v1191_v11 = vpack.c.bf16 %v642_v10, %v641_v12 }
 0x126   : > { %532 = vmatmul.mubr.f32.gmra.mrb[4].mxu0 %v400_v1 }
 0x128   : > { %1162 = vmatpush3.bf16.msra.mxu1 %v1161_v18 }
 0x129   : > { %1164 = vmatprep.subr.bf16.mxu1 %v1163_v21 }
 0x1f1   : > { %v521_v26 = vpop.f32.mrb[0].mxu0 }
 0x1f2   : > { %v545_v27 = vadd.f32 %v982_v24, %v521_v26  ;;  %v523_v28 = vpop.f32.mrb[1].mxu0 }
 0x1f3   : > { %v646_v36 = vrot.slane %v523_v28, 1 }
 0x1f4   : > { %v548_v31 = vmax.f32 %v545_v27, 0.0 }
 0x1f5   : > { %v527_v32 = vpop.f32.mrb[2].mxu0 }
 0x1f6   : > { %v575_v33 = vsel %vm560_vm4, %v548_v31, 0.0  ;;  %v546_v34 = vadd.f32 %v982_v24, %v527_v32  ;;  %v529_v35 = vpop.f32.mrb[3].mxu0 }
 0x1f7   : > { %v647_v37 = vrot.slane %v529_v35, 1  ;;  %v581_v40 = vrot.slane %v575_v33, 1  ;;  %v588_v45 = vrot.slane %v575_v33, 2 }
 0x1f8   : > { %v549_v39 = vmax.f32 %v546_v34, 0.0 }
 0x1f9   : > { %v533_v41 = vpop.f32.mrb[4].mxu0  ;;  %v648_v44 = vsel %vm376_vm1, %v646_v36, %v647_v37 }
 0x1fa   : > { %v589_v46 = vrot.slane %v549_v39, 2  ;;  %v547_v47 = vadd.f32 %v982_v24, %v533_v41  ;;  %v535_v48 = vpop.f32.mrb[5].mxu0  ;;  %v582_v49 = vrot.slane %v549_v39, 1 }
 0x1fb   : > { %v649_v50 = vrot.slane %v535_v48, 1 }
 0x1fc   : > { %v550_v51 = vmax.f32 %v547_v47, 0.0  ;;  %v583_v52 = vsel %vm376_vm1, %v581_v40, %v582_v49  ;;  %v590_v54 = vsel %vm391_vm2, %v588_v45, %v589_v46 }
 0x1fd   : > { %717 = vmatprep.mubr.f32.mxu1 %v583_v52  ;;  %v650_v57 = vsel %vm376_vm1, %v647_v37, %v649_v50 }
 0x1fe   : > { %v577_v58 = vsel %vm565_vm5, %v550_v51, 0.0  ;;  %983 = vmatmul.mubr.msk.f32.vlgmr.msra.gmra.mrb[0].mxu1 %vm560_vm4, %v548_v31 }
 0x1ff   : > { %v584_v59 = vrot.slane %v577_v58, 1  ;;  %v591_v60 = vrot.slane %v577_v58, 2  ;;  %1166 = vmatpush3.bf16.msra.mxu1 %v1163_v21 }
 0x200   : > { %1168 = vmatprep.subr.bf16.mxu1 %v1167_v53 }
 0x201   : > { %v585_v62 = vsel %vm376_vm1, %v582_v49, %v584_v59  ;;  %v592_v1 = vsel %vm391_vm2, %v589_v46, %v591_v60 }
 0x202   : > { %722 = vmatprep.mubr.f32.mxu1 %v585_v62 }
 0x203   : > { %1170 = vmatpush3.bf16.msra.mxu1 %v1167_v53 }
 0x204   : > { %723 = vmatmul.mubr.f32.gmra.mrb[2].mxu1 %v549_v39  ;;  %1172 = vmatprep.subr.bf16.mxu1 %v1171_v61 }
 0x205   : > { %1080 = vmatprep.mubr.f32.mxu1 %v590_v54 }
 0x207   : > { %1174 = vmatpush3.bf16.msra.mxu1 %v1171_v61 }
 0x208   : > { %1176 = vmatprep.subr.bf16.mxu1 %v1175_v2 }
 0x20b   : > { %1178 = vmatpush3.bf16.msra.mxu1 %v1175_v2 }
 0x20c   : > { %1180 = vmatprep.subr.bf16.mxu1 %v1179_v4 }
 0x20f   : > { %1182 = vmatpush3.bf16.msra.mxu1 %v1179_v4 }
 0x210   : > { %1184 = vmatprep.subr.bf16.mxu1 %v1183_v6 }
 0x213   : > { %1186 = vmatpush3.bf16.msra.mxu1 %v1183_v6 }
 0x214   : > { %1188 = vmatprep.subr.bf16.mxu1 %v1187_v9 }
 0x217   : > { %1190 = vmatpush3.bf16.msra.mxu1 %v1187_v9 }
 0x218   : > { %1192 = vmatprep.subr.bf16.mxu1 %v1191_v11 }
 0x21b   : > { %1194 = vmatpush3.bf16.msra.mxu1 %v1191_v11 }
 0x21e   : > { %1081 = vmatmul.mubr.f32.vlgmr.msra.gmra.mrb[4].mxu1 %v592_v1 }
 0x2d1   : > { %v1024_v15 = vpop.f32.mrb[0].mxu1 }
 0x2d2   : > { %v1025_v14 = vpop.f32.mrb[1].mxu1 }
 0x2d3   : > { %v1026_v16 = vadd.f32 %v1025_v14, %v1024_v15 }
 0x2d5   : > { %v720_v17 = vadd.f32 %v1026_v16, %v648_v44 }
 0x2d7   : > { %v1027_v18 = vpop.f32.mrb[2].mxu1 }
 0x2d8   : > { %v1028_v19 = vpop.f32.mrb[3].mxu1 }
 0x2d9   : > { %v1029_v20 = vadd.f32 %v1028_v19, %v1027_v18 }
 0x2db   : > { %v725_v21 = vadd.f32 %v1029_v20, %v650_v57 }
 0x2f1   : > { %v1082_v22 = vpop.f32.mrb[4].mxu1 }
 0x2f2   : > { %v800_v24 = vadd.f32 %v1082_v22, %v725_v21  ;;  %v794_v25 = vpop.f32.mrb[5].mxu1 }
 0x2f3   : > { %v795_v26 = vadd.f32 %v794_v25, %v720_v17 }
 0x2f4   : > { %v811_v27 = vadd.f32 %v984_v23, %v800_v24 }
 0x2f5   : > { %v810_v28 = vadd.f32 %v984_v23, %v795_v26 }
 0x2f6   : > { %v813_v29 = vmax.f32 %v811_v27, 0.0 }
 0x2f7   : > { %v812_v31 = vmax.f32 %v810_v28, 0.0 }
 0x2f8   : > { %815 = vst [vmem:[%s356_s11 + $0x8] sm:$0xff] %v813_v29 }
 0x2f9   : > { %814 = vst [vmem:[%s356_s11] sm:$0xff] %v812_v31 }
 0x2fa   : > { %1419 = shalt.err (!%p1416_p7)
}
 0x2fb   : > { %s1420_s3 = scalar_lea.hbm %s1846_s9, 256  ;;  %s1424_s19 = scalar_lea.hbm %s1901_s6, 512 }
 0x2fc   : > { %p1421_p13 = scmp.ne.s32.totalorder %s1846_s9, %s1420_s3  ;;  %p1425_p2 = scmp.lt.u32.totalorder %s1846_s9, %s1901_s6 }
 0x2fd   : > { %p1426_p11 = scmp.lt.u32.totalorder %s1424_s19, %s1420_s3  ;;  %p1428_p1 = scmp.lt.u32.totalorder %s1420_s3, %s1846_s9 }
 0x2fe   : > { %p1422_p8 = pnand %p1421_p13, %p1935_p6 }
 0x2ff   : > { %p1427_p0 = por %p1426_p11, %p1425_p2 }
 0x300   : > { %p1423_p12 = pneg %p1422_p8 }
 0x301   : > { %p1429_p10 = por %p1428_p1, %p1427_p0 }
 0x303   : > { %p1430_p3 = pnand %p1429_p10, %p1423_p12 }
 0x305   : > { %1433 = shalt.err (!%p1430_p3)
}
 0x306   : > { %s1512_s2 = smov 128   ;;  %s1513_s28 = smov 8  }
 0x307   : > { %1207 = dma.vmem_to_hbm [thread:$0]  (%p1935_p6), %s1841_s16, 256, %s1846_s9, %s817_s13, %s1512_s2, %s1512_s2, %s1513_s28  }
 0x308 PF: > { %s847_s17 = sand.u32 1, %s1480_s21   ;;  %p1936_p4 = scmp.ne.s32.totalorder %s1915_s30, 0 }
 0x309   : > { %p1937_p9 = scmp.ge.s32.totalorder %s1500_s26, 2  ;;  %s848_s11 = scalar_lea.sflag [#allocation4], %s847_s17 }
 0x30b   : > { %p1224_p5 = pnand %p1937_p9, %p1936_p4 }
 0x30d   : > { %1475 = dma.done.wait (!%p1224_p5), %s848_s11, 256  }
 0x30e   : > { %1477 = vsyncadd (!%p1224_p5), %s848_s11, 4294967040  ;;  %s26_s26 = sadd.s32 1, %s1500_s26   ;;  %s1938_s20 = sld [smem:[#allocation16_spill]] }
 0x30f   : > { %p23_p7 = scmp.ge.s32.totalorder %s26_s26, 4   ;;  %s1939_s23 = sld [smem:[#allocation18_spill]] }
 0x310   : > { %s1940_s10 = sld [smem:[#allocation17_spill]]  ;;  %s1941_s21 = smov %s1484_s22 }
 0x311   : > { %s1943_s24 = smov %s1496_s25  ;;  %25 = sbr.rel (!%p23_p7) target bundleno = 13 (0xd), region = 110 }
 0x314   : > { %s1942_s22 = smov %s1938_s20 }
 0x316   : > { %s1944_s25 = smov %s1940_s10 }
 0x318   :  { %853 = vsyncpa [#allocation3], 1 }
 0x319   :  { %855 = vsyncpa [#allocation3 + $0x1], 1 }
 0x31a   :  { %856 = vsyncpa [#allocation6], 1 }
 0x31b   :  { %858 = vsyncpa [#allocation6 + $0x1], 1 }
 0x31c   :  { %859 = vsyncpa [#allocation9], 1 }
 0x31d   :  { %860 = vsyncpa [#allocation4], 1 }
 0x31e   :  { %862 = vsyncpa [#allocation4 + $0x1], 1 }

</bundles_post_ra>
